<compile_context>
chip_gen: v6e
topology: v6e:2x2x1
jax: 0.10.0
libtpu: 0.0.40
codegen_flags: <defaults>
</compile_context>

<pallas_src>
import jax
import jax.numpy as jnp
from jax.experimental import pallas as pl
from jax.experimental.pallas import tpu as pltpu

DIMS = (9, 64, 128, 256, 64, 3)   # Conv1d channel sizes
C_PRED, C_SAMP = 6, 3
IN_PAD = 16                       # layer-1 input channels padded 9 -> 16
OUT_PAD = 8                       # layer-5 output channels padded 3 -> 8
TILE_ROWS_MAX = 4096              # point-rows per grid step for large inputs


def _round_up(x, m):
    return ((x + m - 1) // m) * m


def _mlp_kernel(x_ref, w1_ref, w2_ref, w3_ref, w4_ref, w5_ref, b_ref, o_ref):
    """Fused 5x (matmul + bias + ReLU) over one (TILE, :) block of point rows."""

    def layer(h_bf16, w_ref, bias_row, c_out):
        # bf16 operands on the MXU, f32 accumulation; bias + ReLU in f32.
        y = jnp.dot(h_bf16, w_ref[...], preferred_element_type=jnp.float32)
        return jnp.maximum(y + b_ref[bias_row:bias_row + 1, :c_out], 0.0)

    h = x_ref[...].astype(jnp.bfloat16)                   # (TILE, 16)
    h = layer(h, w1_ref, 0, 64).astype(jnp.bfloat16)      # (TILE, 64)
    h = layer(h, w2_ref, 1, 128).astype(jnp.bfloat16)     # (TILE, 128)
    h = layer(h, w3_ref, 2, 256).astype(jnp.bfloat16)     # (TILE, 256)
    h = layer(h, w4_ref, 3, 64).astype(jnp.bfloat16)      # (TILE, 64)
    y = layer(h, w5_ref, 4, OUT_PAD)                      # (TILE, 8) f32, lanes >=3 are 0
    o_ref[...] = y.astype(o_ref.dtype)


@jax.jit
def mlp_forward(pred_results, sample_points, params):
    """pred_results: (B, N, 6), sample_points: (B, N, 3) -> (B, N, 3)."""
    B, N, c_pred = pred_results.shape
    c_samp = sample_points.shape[-1]
    assert c_pred == C_PRED and c_samp == C_SAMP

    rows = B * N
    # Single packed input: [pred(6) | samp(3) | zero pad(7)] -> (rows, 16).
    x2d = jnp.concatenate(
        (pred_results.reshape(rows, c_pred),
         sample_points.reshape(rows, c_samp)), axis=1)
    x2d = jnp.pad(x2d, ((0, 0), (0, IN_PAD - (c_pred + c_samp))))

    # Row-tile selection: big tiles amortize per-step overhead; medium/large
    # inputs always get >= 2 grid steps so both v7x TensorCores are used.
    if rows <= 1024:
        tile = _round_up(rows, 128)                       # one exact tile
    else:
        tile = min(TILE_ROWS_MAX, _round_up((rows + 1) // 2, 512))
    padded_rows = _round_up(rows, tile)
    if padded_rows != rows:
        x2d = jnp.pad(x2d, ((0, padded_rows - rows), (0, 0)))
    n_tiles = padded_rows // tile

    # Parameters: bf16 matmul operands, layer-1 K padded to 16, layer-5 N
    # padded to 8, all five biases packed into one resident (8, 256) f32 array.
    (w1, b1), (w2, b2), (w3, b3), (w4, b4), (w5, b5) = params
    w1p = jnp.pad(w1, ((0, IN_PAD - DIMS[0]), (0, 0))).astype(jnp.bfloat16)
    w5p = jnp.pad(w5, ((0, 0), (0, OUT_PAD - DIMS[-1]))).astype(jnp.bfloat16)
    b_all = jnp.zeros((8, 256), jnp.float32)
    b_all = b_all.at[0, :64].set(b1[0])
    b_all = b_all.at[1, :128].set(b2[0])
    b_all = b_all.at[2, :256].set(b3[0])
    b_all = b_all.at[3, :64].set(b4[0])
    b_all = b_all.at[4, :DIMS[-1]].set(b5[0])
    weights = [w1p,
               w2.astype(jnp.bfloat16),
               w3.astype(jnp.bfloat16),
               w4.astype(jnp.bfloat16),
               w5p,
               b_all]

    def const_spec(arr):
        # Constant index_map -> same block every grid step (weights resident).
        return pl.BlockSpec(arr.shape, lambda i: (0, 0))

    in_specs = [pl.BlockSpec((tile, IN_PAD), lambda i: (i, 0))]
    in_specs += [const_spec(a) for a in weights]

    out = pl.pallas_call(
        _mlp_kernel,
        out_shape=jax.ShapeDtypeStruct((padded_rows, OUT_PAD),
                                       pred_results.dtype),
        grid_spec=pltpu.PrefetchScalarGridSpec(
            num_scalar_prefetch=0,
            grid=(n_tiles,),
            in_specs=in_specs,
            out_specs=pl.BlockSpec((tile, OUT_PAD), lambda i: (i, 0)),
        ),
        compiler_params=pltpu.CompilerParams(
            dimension_semantics=("parallel",),
            vmem_limit_bytes=48 * 1024 * 1024,   # v7x has 64 MiB VMEM per TC
        ),
    )(x2d, *weights)

    # (rows, 8) -> (B, N, 3); padded rows/lanes hold junk/zeros and are dropped.
    return out[:rows, :DIMS[-1]].reshape(B, N, DIMS[-1])


def init_params(key):
    """Deterministic init matching PyTorch Conv1d default (U[-1/sqrt(fan_in), +])."""
    params = []
    for li in range(5):
        c_in, c_out = DIMS[li], DIMS[li + 1]
        key, kw, kb = jax.random.split(key, 3)
        bound = 1.0 / jnp.sqrt(jnp.float32(c_in))
        # Torch Conv1d weight is (c_out, c_in, 1); we keep its transpose
        # (c_in, c_out) so the kernel can do h @ W directly.
        w = jax.random.uniform(kw, (c_in, c_out), jnp.float32, -bound, bound)
        b = jax.random.uniform(kb, (1, c_out), jnp.float32, -bound, bound)
        params.append((w, b))
    return params


def _reference_forward(pred_results, sample_points, params):
    """Plain-JAX reference mirroring the kernel's bf16-operand / f32-accum path."""
    h = jnp.concatenate((pred_results, sample_points), axis=2)
    for (w, b) in params:
        y = jnp.einsum('bnc,cd->bnd',
                       h.astype(jnp.bfloat16), w.astype(jnp.bfloat16),
                       preferred_element_type=jnp.float32)
        h = jnp.maximum(y + b[0], 0.0)
    return h


if __name__ == "__main__":
    key = jax.random.PRNGKey(0)
    kp, ks, kparams = jax.random.split(key, 3)
    params = init_params(kparams)

    # Case 1: small single-tile path (B=2, N=64 -> rows=128, 1 tile).
    # Case 2: multi-tile path with row padding (B=3, N=512 -> rows=1536,
    #         tile=1024, 2 grid steps, 512 padded rows).
    for (B, N) in ((2, 64), (3, 512)):
        kp, k1 = jax.random.split(kp)
        ks, k2 = jax.random.split(ks)
        pred_results = jax.random.normal(k1, (B, N, 6), jnp.float32)
        sample_points = jax.random.normal(k2, (B, N, 3), jnp.float32)

        y = jax.block_until_ready(mlp_forward(pred_results, sample_points, params))
        y_ref = _reference_forward(pred_results, sample_points, params)

        assert y.shape == (B, N, 3), y.shape
        assert jnp.allclose(y, y_ref, atol=1e-2, rtol=1e-2), \
            f"mismatch vs reference at B={B}, N={N}"

    print("KERNEL_OK")
</pallas_src>

<mosaic_0001>
module attributes {stable_mosaic.version = 11 : i64} {
  func.func @_mlp_kernel(%arg0: i32, %arg1: memref<128x16xf32, #tpu.memory_space<vmem>>, %arg2: memref<16x64xbf16, #tpu.memory_space<vmem>>, %arg3: memref<64x128xbf16, #tpu.memory_space<vmem>>, %arg4: memref<128x256xbf16, #tpu.memory_space<vmem>>, %arg5: memref<256x64xbf16, #tpu.memory_space<vmem>>, %arg6: memref<64x8xbf16, #tpu.memory_space<vmem>>, %arg7: memref<8x256xf32, #tpu.memory_space<vmem>>, %arg8: memref<128x8xf32, #tpu.memory_space<vmem>>) attributes {dimension_semantics = [#tpu.dimension_semantics<parallel>], iteration_bounds = array<i64: 1>, scalar_prefetch = 0 : i64, scratch_operands = 0 : i64, tpu.core_type = #tpu.core_type<tc>, window_params = [{transform_indices = @transform_0, window_bounds = array<i64: 128, 16>}, {pipeline_mode = #tpu.pipeline_mode<synchronous>, transform_indices = @transform_1, window_bounds = array<i64: 16, 64>}, {pipeline_mode = #tpu.pipeline_mode<synchronous>, transform_indices = @transform_2, window_bounds = array<i64: 64, 128>}, {pipeline_mode = #tpu.pipeline_mode<synchronous>, transform_indices = @transform_3, window_bounds = array<i64: 128, 256>}, {pipeline_mode = #tpu.pipeline_mode<synchronous>, transform_indices = @transform_4, window_bounds = array<i64: 256, 64>}, {pipeline_mode = #tpu.pipeline_mode<synchronous>, transform_indices = @transform_5, window_bounds = array<i64: 64, 8>}, {pipeline_mode = #tpu.pipeline_mode<synchronous>, transform_indices = @transform_6, window_bounds = array<i64: 8, 256>}, {transform_indices = @transform_7, window_bounds = array<i64: 128, 8>}]} {
    %c0 = arith.constant 0 : index
    %c0_0 = arith.constant 0 : index
    %0 = vector.load %arg1[%c0, %c0_0] : memref<128x16xf32, #tpu.memory_space<vmem>>, vector<128x16xf32>
    %1 = arith.truncf %0 : vector<128x16xf32> to vector<128x16xbf16>
    %c0_1 = arith.constant 0 : index
    %c0_2 = arith.constant 0 : index
    %2 = vector.load %arg2[%c0_1, %c0_2] : memref<16x64xbf16, #tpu.memory_space<vmem>>, vector<16x64xbf16>
    %cst = arith.constant dense<0.000000e+00> : vector<128x64xf32>
    %3 = tpu.matmul %1, %2, %cst {dimension_numbers = #tpu.dot_dimension_numbers<[1], [0], [0], [1], [0, 0, 1, 1], [], []>} : vector<128x16xbf16>, vector<16x64xbf16>, vector<128x64xf32> -> vector<128x64xf32>
    %c0_3 = arith.constant 0 : index
    %c0_4 = arith.constant 0 : index
    %4 = vector.load %arg7[%c0_3, %c0_4] : memref<8x256xf32, #tpu.memory_space<vmem>>, vector<1x64xf32>
    %5 = vector.broadcast %4 : vector<1x64xf32> to vector<128x64xf32>
    %6 = arith.addf %3, %5 : vector<128x64xf32>
    %cst_5 = arith.constant 0.000000e+00 : f32
    %7 = vector.broadcast %cst_5 : f32 to vector<128x64xf32>
    %8 = arith.maximumf %6, %7 : vector<128x64xf32>
    %9 = arith.truncf %8 : vector<128x64xf32> to vector<128x64xbf16>
    %c0_6 = arith.constant 0 : index
    %c0_7 = arith.constant 0 : index
    %10 = vector.load %arg3[%c0_6, %c0_7] : memref<64x128xbf16, #tpu.memory_space<vmem>>, vector<64x128xbf16>
    %cst_8 = arith.constant dense<0.000000e+00> : vector<128x128xf32>
    %11 = tpu.matmul %9, %10, %cst_8 {dimension_numbers = #tpu.dot_dimension_numbers<[1], [0], [0], [1], [0, 0, 1, 1], [], []>} : vector<128x64xbf16>, vector<64x128xbf16>, vector<128x128xf32> -> vector<128x128xf32>
    %c1 = arith.constant 1 : index
    %c0_9 = arith.constant 0 : index
    %12 = vector.load %arg7[%c1, %c0_9] : memref<8x256xf32, #tpu.memory_space<vmem>>, vector<1x128xf32>
    %13 = vector.broadcast %12 : vector<1x128xf32> to vector<128x128xf32>
    %14 = arith.addf %11, %13 : vector<128x128xf32>
    %cst_10 = arith.constant 0.000000e+00 : f32
    %15 = vector.broadcast %cst_10 : f32 to vector<128x128xf32>
    %16 = arith.maximumf %14, %15 : vector<128x128xf32>
    %17 = arith.truncf %16 : vector<128x128xf32> to vector<128x128xbf16>
    %c0_11 = arith.constant 0 : index
    %c0_12 = arith.constant 0 : index
    %18 = vector.load %arg4[%c0_11, %c0_12] : memref<128x256xbf16, #tpu.memory_space<vmem>>, vector<128x256xbf16>
    %cst_13 = arith.constant dense<0.000000e+00> : vector<128x256xf32>
    %19 = tpu.matmul %17, %18, %cst_13 {dimension_numbers = #tpu.dot_dimension_numbers<[1], [0], [0], [1], [0, 0, 1, 1], [], []>} : vector<128x128xbf16>, vector<128x256xbf16>, vector<128x256xf32> -> vector<128x256xf32>
    %c2 = arith.constant 2 : index
    %c0_14 = arith.constant 0 : index
    %20 = vector.load %arg7[%c2, %c0_14] : memref<8x256xf32, #tpu.memory_space<vmem>>, vector<1x256xf32>
    %21 = vector.broadcast %20 : vector<1x256xf32> to vector<128x256xf32>
    %22 = arith.addf %19, %21 : vector<128x256xf32>
    %cst_15 = arith.constant 0.000000e+00 : f32
    %23 = vector.broadcast %cst_15 : f32 to vector<128x256xf32>
    %24 = arith.maximumf %22, %23 : vector<128x256xf32>
    %25 = arith.truncf %24 : vector<128x256xf32> to vector<128x256xbf16>
    %c0_16 = arith.constant 0 : index
    %c0_17 = arith.constant 0 : index
    %26 = vector.load %arg5[%c0_16, %c0_17] : memref<256x64xbf16, #tpu.memory_space<vmem>>, vector<256x64xbf16>
    %cst_18 = arith.constant dense<0.000000e+00> : vector<128x64xf32>
    %27 = tpu.matmul %25, %26, %cst_18 {dimension_numbers = #tpu.dot_dimension_numbers<[1], [0], [0], [1], [0, 0, 1, 1], [], []>} : vector<128x256xbf16>, vector<256x64xbf16>, vector<128x64xf32> -> vector<128x64xf32>
    %c3 = arith.constant 3 : index
    %c0_19 = arith.constant 0 : index
    %28 = vector.load %arg7[%c3, %c0_19] : memref<8x256xf32, #tpu.memory_space<vmem>>, vector<1x64xf32>
    %29 = vector.broadcast %28 : vector<1x64xf32> to vector<128x64xf32>
    %30 = arith.addf %27, %29 : vector<128x64xf32>
    %cst_20 = arith.constant 0.000000e+00 : f32
    %31 = vector.broadcast %cst_20 : f32 to vector<128x64xf32>
    %32 = arith.maximumf %30, %31 : vector<128x64xf32>
    %33 = arith.truncf %32 : vector<128x64xf32> to vector<128x64xbf16>
    %c0_21 = arith.constant 0 : index
    %c0_22 = arith.constant 0 : index
    %34 = vector.load %arg6[%c0_21, %c0_22] : memref<64x8xbf16, #tpu.memory_space<vmem>>, vector<64x8xbf16>
    %cst_23 = arith.constant dense<0.000000e+00> : vector<128x8xf32>
    %35 = tpu.matmul %33, %34, %cst_23 {dimension_numbers = #tpu.dot_dimension_numbers<[1], [0], [0], [1], [0, 0, 1, 1], [], []>} : vector<128x64xbf16>, vector<64x8xbf16>, vector<128x8xf32> -> vector<128x8xf32>
    %c4 = arith.constant 4 : index
    %c0_24 = arith.constant 0 : index
    %36 = vector.load %arg7[%c4, %c0_24] : memref<8x256xf32, #tpu.memory_space<vmem>>, vector<1x8xf32>
    %37 = vector.broadcast %36 : vector<1x8xf32> to vector<128x8xf32>
    %38 = arith.addf %35, %37 : vector<128x8xf32>
    %cst_25 = arith.constant 0.000000e+00 : f32
    %39 = vector.broadcast %cst_25 : f32 to vector<128x8xf32>
    %40 = arith.maximumf %38, %39 : vector<128x8xf32>
    %c0_26 = arith.constant 0 : index
    %c0_27 = arith.constant 0 : index
    %41 = vector.load %arg8[%c0_26, %c0_27] : memref<128x8xf32, #tpu.memory_space<vmem>>, vector<128x8xf32>
    tpu.vector_store %arg8[%c0_26, %c0_27], %40 {strides = array<i32>} : memref<128x8xf32, #tpu.memory_space<vmem>>, vector<128x8xf32>,
    return
  }
  func.func @transform_0(%arg0: i32) -> (i32, i32) {
    %c0_i32 = arith.constant 0 : i32
    %c0_i32_0 = arith.constant 0 : i32
    return %arg0, %c0_i32 : i32, i32
  }
  func.func @transform_1(%arg0: i32) -> (i32, i32) {
    %c0_i32 = arith.constant 0 : i32
    %c0_i32_0 = arith.constant 0 : i32
    %c0_i32_1 = arith.constant 0 : i32
    return %c0_i32, %c0_i32_0 : i32, i32
  }
  func.func @transform_2(%arg0: i32) -> (i32, i32) {
    %c0_i32 = arith.constant 0 : i32
    %c0_i32_0 = arith.constant 0 : i32
    %c0_i32_1 = arith.constant 0 : i32
    return %c0_i32, %c0_i32_0 : i32, i32
  }
  func.func @transform_3(%arg0: i32) -> (i32, i32) {
    %c0_i32 = arith.constant 0 : i32
    %c0_i32_0 = arith.constant 0 : i32
    %c0_i32_1 = arith.constant 0 : i32
    return %c0_i32, %c0_i32_0 : i32, i32
  }
  func.func @transform_4(%arg0: i32) -> (i32, i32) {
    %c0_i32 = arith.constant 0 : i32
    %c0_i32_0 = arith.constant 0 : i32
    %c0_i32_1 = arith.constant 0 : i32
    return %c0_i32, %c0_i32_0 : i32, i32
  }
  func.func @transform_5(%arg0: i32) -> (i32, i32) {
    %c0_i32 = arith.constant 0 : i32
    %c0_i32_0 = arith.constant 0 : i32
    %c0_i32_1 = arith.constant 0 : i32
    return %c0_i32, %c0_i32_0 : i32, i32
  }
  func.func @transform_6(%arg0: i32) -> (i32, i32) {
    %c0_i32 = arith.constant 0 : i32
    %c0_i32_0 = arith.constant 0 : i32
    %c0_i32_1 = arith.constant 0 : i32
    return %c0_i32, %c0_i32_0 : i32, i32
  }
  func.func @transform_7(%arg0: i32) -> (i32, i32) {
    %c0_i32 = arith.constant 0 : i32
    %c0_i32_0 = arith.constant 0 : i32
    return %arg0, %c0_i32 : i32, i32
  }
}

</mosaic_0001>

<bundles_post_ra>
// kernel: mlp_forward.1
= control target key start
LH: loop header
LB: loop body
LE: loop exit
PB: predicated region body
PF: predicated region fallthrough
CT: control target
= control target key end

     0   :  { %vm60_vm0 = vcmask 130048   ;;  %vm239_vm1 = vcmask 523264   ;;  %vm1075_vm2 = vcmask 64512   ;;  %s1778_s1 = inlined_call_operand.vmem [shape: bf16[16,64], index: 1, kind: input, shape index: {}]   ;;  %s1779_s0 = inlined_call_operand.vmem [shape: f32[128,16], index: 0, kind: input, shape index: {}]   ;;  %s1780_s2 = inlined_call_operand.vmem [shape: bf16[64,128], index: 2, kind: input, shape index: {}]   ;;  %s1781_s3 = inlined_call_operand.vmem [shape: bf16[128,256], index: 3, kind: input, shape index: {}]   ;;  %s1782_s6 = inlined_call_operand.vmem [shape: f32[8,256], index: 6, kind: input, shape index: {}]   ;;  %s1783_s4 = inlined_call_operand.vmem [shape: bf16[256,64], index: 4, kind: input, shape index: {}]   ;;  %s1784_s5 = inlined_call_operand.vmem [shape: bf16[64,8], index: 5, kind: input, shape index: {}]   ;;  %s1785_s7 = inlined_call_operand.vmem [shape: f32[128,8], index: 7, kind: output, shape index: {}]  }
   0x1   :  { %v1334_v0 = vld [vmem:[%s1778_s1] sm:$0xff]   ;;  %v28_v2 = vld [vmem:[%s1779_s0 + $0x8] sm:$0xff]  ;;  %v29_v3 = vld [vmem:[%s1779_s0 + $0x10] sm:$0xff] }
   0x2   :  { %v27_v1 = vld [vmem:[%s1779_s0] sm:$0xff]  ;;  %1259 = vmatprep.subr.bf16.mxu0 %v1334_v0  ;;  %v30_v5 = vld [vmem:[%s1779_s0 + $0x18] sm:$0xff]  ;;  %v32_v7 = vld [vmem:[%s1779_s0 + $0x28] sm:$0xff] }
   0x3   :  { %v43_v4 = vpack.c.bf16 %v28_v2, %v27_v1  ;;  %v31_v6 = vld [vmem:[%s1779_s0 + $0x20] sm:$0xff]  ;;  %1260 = vmatpush3.bf16.msra.mxu0 %v1334_v0  ;;  %v44_v8 = vpack.c.bf16 %v30_v5, %v29_v3  ;;  %v33_v10 = vld [vmem:[%s1779_s0 + $0x30] sm:$0xff]  ;;  %v34_v11 = vld [vmem:[%s1779_s0 + $0x38] sm:$0xff] }
   0x4   :  { %v45_v9 = vpack.c.bf16 %v32_v7, %v31_v6  ;;  %v35_v12 = vld [vmem:[%s1779_s0 + $0x40] sm:$0xff]  ;;  %v36_v13 = vld [vmem:[%s1779_s0 + $0x48] sm:$0xff]  ;;  %v1335_v14 = vld [vmem:[%s1780_s2 + $0x18] sm:$0xff]   ;;  %v46_v15 = vpack.c.bf16 %v34_v11, %v33_v10 }
   0x5   :  { %1261 = vmatprep.mubr.msk.bf16.mxu0 %vm60_vm0, %v43_v4  ;;  %1277 = vmatprep.subr.bf16.mxu1 %v1335_v14  ;;  %v47_v16 = vpack.c.bf16 %v36_v13, %v35_v12  ;;  %v37_v17 = vld [vmem:[%s1779_s0 + $0x50] sm:$0xff]  ;;  %v38_v18 = vld [vmem:[%s1779_s0 + $0x58] sm:$0xff]  ;;  %v39_v19 = vld [vmem:[%s1779_s0 + $0x60] sm:$0xff] }
   0x6   :  { %1262 = vmatmul.mubr.msk.bf16.vlgmr.msra.gmra.mxu0 %vm60_vm0, %v44_v8  ;;  %1278 = vmatpush3.bf16.msra.mxu1 %v1335_v14  ;;  %v40_v20 = vld [vmem:[%s1779_s0 + $0x68] sm:$0xff]  ;;  %v48_v21 = vpack.c.bf16 %v38_v18, %v37_v17  ;;  %v41_v23 = vld [vmem:[%s1779_s0 + $0x70] sm:$0xff]  ;;  %v42_v24 = vld [vmem:[%s1779_s0 + $0x78] sm:$0xff] }
   0x7   :  { %1265 = vmatprep.mubr.msk.bf16.mxu0 %vm60_vm0, %v45_v9  ;;  %v49_v22 = vpack.c.bf16 %v40_v20, %v39_v19  ;;  %v50_v25 = vpack.c.bf16 %v42_v24, %v41_v23  ;;  %v1336_v26 = vld [vmem:[%s1780_s2 + $0x10] sm:$0xff]   ;;  %v1337_v27 = vld [vmem:[%s1780_s2 + $0x8] sm:$0xff]   ;;  %v1338_v28 = vld [vmem:[%s1780_s2] sm:$0xff]  }
   0x8   :  { %1279 = vmatprep.subr.bf16.mxu1 %v1336_v26  ;;  %v1339_v29 = vld [vmem:[%s1781_s3 + $0x70] ss:$8 sps:$4 sm:$0xff]   ;;  %v1341_v30 = vld [vmem:[%s1781_s3 + $0x74] ss:$8 sps:$4 sm:$0xff]   ;;  %v1344_v31 = vld [vmem:[%s1781_s3 + $0x64] ss:$8 sps:$4 sm:$0xff]  }
   0x9   :  { %494 = vmatprep.subr.bf16.mxu0 %v1341_v30  ;;  %v1342_v32 = vld [vmem:[%s1781_s3 + $0x60] ss:$8 sps:$4 sm:$0xff]   ;;  %v1347_v33 = vld [vmem:[%s1781_s3 + $0x54] ss:$8 sps:$4 sm:$0xff]   ;;  %v1345_v34 = vld [vmem:[%s1781_s3 + $0x50] ss:$8 sps:$4 sm:$0xff]  }
   0xa   :  { %1280 = vmatpush3.bf16.msra.mxu1 %v1336_v26  ;;  %495 = vmatpush1.bf16.msra.mxu0 %v1339_v29  ;;  %v1350_v35 = vld [vmem:[%s1781_s3 + $0x44] ss:$8 sps:$4 sm:$0xff]   ;;  %v1348_v36 = vld [vmem:[%s1781_s3 + $0x40] ss:$8 sps:$4 sm:$0xff]   ;;  %v1353_v37 = vld [vmem:[%s1781_s3 + $0x34] ss:$8 sps:$4 sm:$0xff]  }
   0xb   :  { %1281 = vmatprep.subr.bf16.mxu1 %v1337_v27  ;;  %496 = vmatprep.subr.bf16.mxu0 %v1344_v31  ;;  %v1351_v38 = vld [vmem:[%s1781_s3 + $0x30] ss:$8 sps:$4 sm:$0xff]   ;;  %v53_v41 = vld [vmem:[%s1782_s6] ss:$0 sm:$0xff] }
   0xe   :  { %1266 = vmatmul.mubr.msk.bf16.gmra.mxu0 %vm60_vm0, %v46_v15  ;;  %1282 = vmatpush3.bf16.msra.mxu1 %v1337_v27 }
   0xf   :  { %1269 = vmatprep.mubr.msk.bf16.mxu0 %vm60_vm0, %v47_v16  ;;  %1283 = vmatprep.subr.bf16.mxu1 %v1338_v28 }
  0x10   :  { %497 = vmatpush1.bf16.msra.mxu0 %v1342_v32  ;;  %v1356_v32 = vld [vmem:[%s1781_s3 + $0x24] ss:$8 sps:$4 sm:$0xff]  }
  0x11   :  { %498 = vmatprep.subr.bf16.mxu0 %v1347_v33  ;;  %v1354_v33 = vld [vmem:[%s1781_s3 + $0x20] ss:$8 sps:$4 sm:$0xff]  }
  0x12   :  { %1284 = vmatpush3.bf16.msra.mxu1 %v1338_v28 }
  0x14   :  { %499 = vmatpush1.bf16.msra.mxu0 %v1345_v34  ;;  %v1359_v34 = vld [vmem:[%s1781_s3 + $0x14] ss:$8 sps:$4 sm:$0xff]  }
  0x15   :  { %500 = vmatprep.subr.bf16.mxu0 %v1350_v35  ;;  %v1357_v35 = vld [vmem:[%s1781_s3 + $0x10] ss:$8 sps:$4 sm:$0xff]  }
  0x16   :  { %1270 = vmatmul.mubr.msk.bf16.gmra.mxu0 %vm60_vm0, %v48_v21 }
  0x17   :  { %1273 = vmatprep.mubr.msk.bf16.mxu0 %vm60_vm0, %v49_v22 }
  0x18   :  { %501 = vmatpush1.bf16.msra.mxu0 %v1348_v36  ;;  %v1362_v36 = vld [vmem:[%s1781_s3 + $0x4] ss:$8 sps:$4 sm:$0xff]  }
  0x19   :  { %502 = vmatprep.subr.bf16.mxu0 %v1353_v37  ;;  %v1360_v37 = vld [vmem:[%s1781_s3] ss:$8 sps:$4 sm:$0xff]  }
  0x1c   :  { %503 = vmatpush1.bf16.msra.mxu0 %v1351_v38  ;;  %v1383_v38 = vmov 0  }
  0x1d   :  { %504 = vmatprep.subr.bf16.mxu0 %v1356_v32 }
  0x1e   :  { %1274 = vmatmul.mubr.msk.bf16.gmra.mxu0 %vm60_vm0, %v50_v25 }
  0x1f   :  { %526 = vmatprep.mubr.bf16.mxu0 %v1383_v38 }
  0x20   :  { %505 = vmatpush1.bf16.msra.mxu0 %v1354_v33 }
  0x21   :  { %506 = vmatprep.subr.bf16.mxu0 %v1359_v34 }
  0x24   :  { %507 = vmatpush1.bf16.msra.mxu0 %v1357_v35 }
  0x25   :  { %508 = vmatprep.subr.bf16.mxu0 %v1362_v36 }
  0x28   :  { %509 = vmatpush1.bf16.msra.mxu0 %v1360_v37 }
  0xc6   :  { %v1263_v39 = vpop.f32.mrf.mxu0 }
  0xc7   :  { %v128_v45 = vadd.f32 %v1263_v39, %v53_v41  ;;  %v1363_v39 = vld [vmem:[%s1783_s4 + $0x78] sm:$0xff]  }
  0xc8   :  { %v119_v40 = vpop.f32.mrf.mxu0  ;;  %1183 = vmatprep.subr.bf16.mxu1 %v1363_v39 }
  0xc9   :  { %v120_v43 = vadd.f32 %v119_v40, %v53_v41  ;;  %v184_v52 = vmax.f32 %v128_v45, 0.0  ;;  %v1364_v40 = vld [vmem:[%s1783_s4 + $0x38] sm:$0xff]   ;;  %v1369_v45 = vld [vmem:[%s1783_s4 + $0x60] sm:$0xff]  }
  0xca   :  { %v1264_v42 = vpop.f32.mrf.mxu0 }
  0xcb   :  { %v131_v44 = vadd.f32 %v1264_v42, %v53_v41  ;;  %v182_v50 = vmax.f32 %v120_v43, 0.0  ;;  %v1366_v42 = vld [vmem:[%s1783_s4 + $0x30] sm:$0xff]   ;;  %v1367_v43 = vld [vmem:[%s1783_s4 + $0x68] sm:$0xff]  }
  0xcc   :  { %v122_v46 = vpop.f32.mrf.mxu0 }
  0xcd   :  { %v123_v47 = vadd.f32 %v122_v46, %v53_v41  ;;  %v185_v48 = vmax.f32 %v131_v44, 0.0  ;;  %v1368_v44 = vld [vmem:[%s1783_s4 + $0x28] sm:$0xff]   ;;  %v1370_v46 = vld [vmem:[%s1783_s4 + $0x20] sm:$0xff]  }
  0xce   :  { %v1267_v49 = vpop.f32.mrf.mxu0 }
  0xcf   :  { %v183_v51 = vmax.f32 %v123_v47, 0.0  ;;  %v144_v53 = vadd.f32 %v1267_v49, %v53_v41  ;;  %v199_v57 = vpack.c.bf16 %v185_v48, %v184_v52  ;;  %v1371_v47 = vld [vmem:[%s1783_s4 + $0x58] sm:$0xff]  }
  0xd0   :  { %v135_v54 = vpop.f32.mrf.mxu0  ;;  %v1372_v48 = vld [vmem:[%s1783_s4 + $0x18] sm:$0xff]  }
  0xd1   :  { %v136_v55 = vadd.f32 %v135_v54, %v53_v41  ;;  %v198_v56 = vpack.c.bf16 %v183_v51, %v182_v50  ;;  %v188_v60 = vmax.f32 %v144_v53, 0.0  ;;  %v214_v51 = vld [vmem:[%s1782_s6 + $0x1] ss:$0 sm:$0xff] }
  0xd2   :  { %v1268_v58 = vpop.f32.mrf.mxu0 }
  0xd3   :  { %v147_v59 = vadd.f32 %v1268_v58, %v53_v41  ;;  %1285 = vmatprep.mubr.msk.bf16.mxu1 %vm239_vm1, %v198_v56  ;;  %v186_v62 = vmax.f32 %v136_v55, 0.0 }
  0xd4   :  { %v138_v61 = vpop.f32.mrf.mxu0  ;;  %1286 = vmatmul.mubr.msk.bf16.vlgmr.msra.gmra.mxu1 %vm239_vm1, %v199_v57 }
  0xd5   :  { %v189_v63 = vmax.f32 %v147_v59, 0.0  ;;  %v139_v0 = vadd.f32 %v138_v61, %v53_v41  ;;  %1184 = vmatpush3.bf16.msra.mxu1 %v1364_v40 }
  0xd6   :  { %v1271_v1 = vpop.f32.mrf.mxu0 }
  0xd7   :  { %v187_v2 = vmax.f32 %v139_v0, 0.0  ;;  %v201_v3 = vpack.c.bf16 %v189_v63, %v188_v60  ;;  %v160_v4 = vadd.f32 %v1271_v1, %v53_v41 }
  0xd8   :  { %v151_v5 = vpop.f32.mrf.mxu0 }
  0xd9   :  { %v200_v6 = vpack.c.bf16 %v187_v2, %v186_v62  ;;  %v152_v7 = vadd.f32 %v151_v5, %v53_v41  ;;  %v192_v10 = vmax.f32 %v160_v4, 0.0 }
  0xda   :  { %v1272_v8 = vpop.f32.mrf.mxu0 }
  0xdb   :  { %1289 = vmatprep.mubr.msk.bf16.mxu1 %vm239_vm1, %v200_v6  ;;  %v163_v9 = vadd.f32 %v1272_v8, %v53_v41  ;;  %v190_v12 = vmax.f32 %v152_v7, 0.0 }
  0xdc   :  { %1290 = vmatmul.mubr.msk.bf16.gmra.mxu1 %vm239_vm1, %v201_v3  ;;  %v154_v11 = vpop.f32.mrf.mxu0 }
  0xdd   :  { %v193_v13 = vmax.f32 %v163_v9, 0.0  ;;  %v155_v14 = vadd.f32 %v154_v11, %v53_v41 }
  0xde   :  { %v1275_v15 = vpop.f32.mrf.mxu0 }
  0xdf   :  { %v191_v16 = vmax.f32 %v155_v14, 0.0  ;;  %v203_v17 = vpack.c.bf16 %v193_v13, %v192_v10  ;;  %v176_v18 = vadd.f32 %v1275_v15, %v53_v41 }
  0xe0   :  { %v167_v19 = vpop.f32.mrf.mxu0 }
  0xe1   :  { %v202_v20 = vpack.c.bf16 %v191_v16, %v190_v12  ;;  %v168_v21 = vadd.f32 %v167_v19, %v53_v41  ;;  %v196_v24 = vmax.f32 %v176_v18, 0.0 }
  0xe2   :  { %v1276_v22 = vpop.f32.mrf.mxu0 }
  0xe3   :  { %1293 = vmatprep.mubr.msk.bf16.mxu1 %vm239_vm1, %v202_v20  ;;  %v179_v23 = vadd.f32 %v1276_v22, %v53_v41  ;;  %v194_v26 = vmax.f32 %v168_v21, 0.0 }
  0xe4   :  { %1294 = vmatmul.mubr.msk.bf16.gmra.mxu1 %vm239_vm1, %v203_v17  ;;  %v170_v25 = vpop.f32.mrf.mxu0 }
  0xe5   :  { %v197_v27 = vmax.f32 %v179_v23, 0.0  ;;  %v171_v28 = vadd.f32 %v170_v25, %v53_v41  ;;  %v1365_v41 = vld [vmem:[%s1783_s4 + $0x70] sm:$0xff]  }
  0xe6   :  { %1185 = vmatprep.subr.bf16.mxu1 %v1365_v41 }
  0xe7   :  { %v195_v29 = vmax.f32 %v171_v28, 0.0  ;;  %v205_v30 = vpack.c.bf16 %v197_v27, %v196_v24  ;;  %1186 = vmatpush3.bf16.msra.mxu1 %v1366_v42 }
  0xe8   :  { %1187 = vmatprep.subr.bf16.mxu1 %v1367_v43  ;;  %v1373_v43 = vld [vmem:[%s1783_s4 + $0x50] sm:$0xff]  }
  0xe9   :  { %v204_v31 = vpack.c.bf16 %v195_v29, %v194_v26 }
  0xeb   :  { %1297 = vmatprep.mubr.msk.bf16.mxu1 %vm239_vm1, %v204_v31  ;;  %1188 = vmatpush3.bf16.msra.mxu1 %v1368_v44  ;;  %v1374_v44 = vld [vmem:[%s1783_s4 + $0x10] sm:$0xff]  }
  0xec   :  { %1298 = vmatmul.mubr.msk.bf16.gmra.mxu1 %vm239_vm1, %v205_v30  ;;  %1189 = vmatprep.subr.bf16.mxu1 %v1369_v45  ;;  %v1375_v45 = vld [vmem:[%s1783_s4 + $0x48] sm:$0xff]  }
  0xef   :  { %1190 = vmatpush3.bf16.msra.mxu1 %v1370_v46  ;;  %v1377_v46 = vld [vmem:[%s1783_s4 + $0x40] sm:$0xff]  }
  0xf0   :  { %1191 = vmatprep.subr.bf16.mxu1 %v1371_v47  ;;  %v1378_v47 = vld [vmem:[%s1783_s4] sm:$0xff]  }
  0xf3   :  { %1192 = vmatpush3.bf16.msra.mxu1 %v1372_v48  ;;  %v1379_v48 = vld [vmem:[%s1784_s5 + $0x18] sm:$0xff]  }
  0xf4   :  { %1193 = vmatprep.subr.bf16.mxu1 %v1373_v43  ;;  %1301 = vmatprep.subr.bf16.mxu0 %v1379_v48 }
  0xf7   :  { %1194 = vmatpush3.bf16.msra.mxu1 %v1374_v44 }
  0xf8   :  { %1195 = vmatprep.subr.bf16.mxu1 %v1375_v45 }
 0x194   :  { %v1287_v49 = vpop.f32.mrf.mxu1 }
 0x195   :  { %v307_v63 = vadd.f32 %v1287_v49, %v214_v51  ;;  %v404_v49 = vlaneseq }
 0x196   :  { %v298_v50 = vpop.f32.mrf.mxu1 }
 0x197   :  { %v299_v53 = vadd.f32 %v298_v50, %v214_v51  ;;  %v363_v2 = vmax.f32 %v307_v63, 0.0  ;;  %v405_v50 = vshrl.u32 %v404_v49, 7 }
 0x198   :  { %v1288_v52 = vpop.f32.mrf.mxu1 }
 0x199   :  { %v361_v57 = vmax.f32 %v299_v53, 0.0  ;;  %v310_v60 = vadd.f32 %v1288_v52, %v214_v51  ;;  %v406_v52 = vsub.s32 0, %v405_v50  ;;  %v1117_v53 = vld [vmem:[%s1782_s6 + $0x2] ss:$8 sm:$0x3] }
 0x19a   :  { %v301_v54 = vpop.f32.mrf.mxu1 }
 0x19b   :  { %v302_v55 = vadd.f32 %v301_v54, %v214_v51  ;;  %v364_v0 = vmax.f32 %v310_v60, 0.0 }
 0x19c   :  { %v1291_v56 = vpop.f32.mrf.mxu1 }
 0x19d   :  { %v362_v58 = vmax.f32 %v302_v55, 0.0  ;;  %v378_v3 = vpack.c.bf16 %v364_v0, %v363_v2  ;;  %v323_v13 = vadd.f32 %v1291_v56, %v214_v51  ;;  %v1621_v56 = vrot.slane %v1117_v53, %v406_v52 }
 0x19e   :  { %v314_v59 = vpop.f32.mrf.mxu1 }
 0x19f   :  { %v377_v61 = vpack.c.bf16 %v362_v58, %v361_v57  ;;  %v315_v6 = vadd.f32 %v314_v59, %v214_v51  ;;  %v367_v16 = vmax.f32 %v323_v13, 0.0 }
 0x1a0   :  { %v1292_v62 = vpop.f32.mrf.mxu1 }
 0x1a1   :  { %527 = vmatmul.mubr.bf16.vlgmr.msra.gmra.mxu0 %v377_v61  ;;  %v365_v9 = vmax.f32 %v315_v6, 0.0  ;;  %v326_v10 = vadd.f32 %v1292_v62, %v214_v51 }
 0x1a2   :  { %536 = vmatprep.mubr.bf16.mxu0 %v1383_v38  ;;  %v317_v1 = vpop.f32.mrf.mxu1  ;;  %1302 = vmatpush3.bf16.msra.mxu0 %v1379_v48 }
 0x1a3   :  { %v318_v4 = vadd.f32 %v317_v1, %v214_v51  ;;  %v368_v14 = vmax.f32 %v326_v10, 0.0 }
 0x1a4   :  { %v1295_v5 = vpop.f32.mrf.mxu1 }
 0x1a5   :  { %v366_v7 = vmax.f32 %v318_v4, 0.0  ;;  %v380_v17 = vpack.c.bf16 %v368_v14, %v367_v16  ;;  %v339_v24 = vadd.f32 %v1295_v5, %v214_v51 }
 0x1a6   :  { %v330_v8 = vpop.f32.mrf.mxu1 }
 0x1a7   :  { %v379_v11 = vpack.c.bf16 %v366_v7, %v365_v9  ;;  %v331_v18 = vadd.f32 %v330_v8, %v214_v51  ;;  %v371_v28 = vmax.f32 %v339_v24, 0.0 }
 0x1a8   :  { %v1296_v12 = vpop.f32.mrf.mxu1 }
 0x1a9   :  { %537 = vmatmul.mubr.bf16.gmra.mxu0 %v378_v3  ;;  %v369_v21 = vmax.f32 %v331_v18, 0.0  ;;  %v342_v25 = vadd.f32 %v1296_v12, %v214_v51 }
 0x1aa   :  { %546 = vmatprep.mubr.bf16.mxu0 %v1383_v38  ;;  %v333_v15 = vpop.f32.mrf.mxu1 }
 0x1ab   :  { %v334_v19 = vadd.f32 %v333_v15, %v214_v51  ;;  %v372_v29 = vmax.f32 %v342_v25, 0.0 }
 0x1ac   :  { %v1299_v20 = vpop.f32.mrf.mxu1 }
 0x1ad   :  { %v370_v22 = vmax.f32 %v334_v19, 0.0  ;;  %v382_v31 = vpack.c.bf16 %v372_v29, %v371_v28  ;;  %v355_v36 = vadd.f32 %v1299_v20, %v214_v51 }
 0x1ae   :  { %v346_v23 = vpop.f32.mrf.mxu1 }
 0x1af   :  { %v381_v26 = vpack.c.bf16 %v370_v22, %v369_v21  ;;  %v347_v32 = vadd.f32 %v346_v23, %v214_v51  ;;  %v375_v40 = vmax.f32 %v355_v36, 0.0 }
 0x1b0   :  { %v1300_v27 = vpop.f32.mrf.mxu1 }
 0x1b1   :  { %547 = vmatmul.mubr.bf16.gmra.mxu0 %v379_v11  ;;  %v373_v34 = vmax.f32 %v347_v32, 0.0  ;;  %v358_v37 = vadd.f32 %v1300_v27, %v214_v51 }
 0x1b2   :  { %556 = vmatprep.mubr.bf16.mxu0 %v1383_v38  ;;  %v349_v30 = vpop.f32.mrf.mxu1 }
 0x1b3   :  { %v350_v33 = vadd.f32 %v349_v30, %v214_v51  ;;  %v376_v41 = vmax.f32 %v358_v37, 0.0  ;;  %v410_v51 = vsub.s32 1, %v405_v50 }
 0x1b5   :  { %v374_v35 = vmax.f32 %v350_v33, 0.0  ;;  %v384_v42 = vpack.c.bf16 %v376_v41, %v375_v40  ;;  %v1619_v55 = vrot.slane %v1117_v53, %v410_v51 }
 0x1b7   :  { %v383_v39 = vpack.c.bf16 %v374_v35, %v373_v34 }
 0x1b9   :  { %557 = vmatmul.mubr.bf16.gmra.mxu0 %v380_v17 }
 0x1ba   :  { %566 = vmatprep.mubr.bf16.mxu0 %v1383_v38 }
 0x1c1   :  { %567 = vmatmul.mubr.bf16.gmra.mxu0 %v381_v26 }
 0x1c2   :  { %576 = vmatprep.mubr.bf16.mxu0 %v1383_v38 }
 0x1c9   :  { %577 = vmatmul.mubr.bf16.gmra.mxu0 %v382_v31 }
 0x1ca   :  { %586 = vmatprep.mubr.bf16.mxu0 %v1383_v38 }
 0x1d1   :  { %587 = vmatmul.mubr.bf16.gmra.mxu0 %v383_v39 }
 0x1d2   :  { %596 = vmatprep.mubr.bf16.mxu0 %v1383_v38  ;;  %v1376_v38 = vld [vmem:[%s1783_s4 + $0x8] sm:$0xff]  }
 0x1d3   :  { %1196 = vmatpush3.bf16.msra.mxu1 %v1376_v38 }
 0x1d4   :  { %1197 = vmatprep.subr.bf16.mxu1 %v1377_v46 }
 0x1d7   :  { %1198 = vmatpush3.bf16.msra.mxu1 %v1378_v47 }
 0x1d8   :  { %1325 = vmatprep.subr.bf16.mxu1 %v1379_v48 }
 0x1d9   :  { %597 = vmatmul.mubr.bf16.gmra.mxu0 %v384_v42 }
 0x261   :  { %v528_v54 = vpop.f32.mrf.mxu0 }
 0x262   :  { %v529_v61 = vadd.f32 %v528_v54, %v1621_v56 }
 0x263   :  { %v530_v57 = vpop.f32.mrf.mxu0 }
 0x264   :  { %v531_v59 = vadd.f32 %v530_v57, %v1619_v55  ;;  %v607_v4 = vmax.f32 %v529_v61, 0.0 }
 0x265   :  { %v532_v58 = vpop.f32.mrf.mxu0 }
 0x266   :  { %v533_v60 = vadd.f32 %v532_v58, %v1621_v56  ;;  %v608_v2 = vmax.f32 %v531_v59, 0.0 }
 0x267   :  { %v534_v62 = vpop.f32.mrf.mxu0 }
 0x268   :  { %v535_v63 = vadd.f32 %v534_v62, %v1619_v55  ;;  %v609_v0 = vmax.f32 %v533_v60, 0.0 }
 0x269   :  { %v538_v1 = vpop.f32.mrf.mxu0 }
 0x26a   :  { %v610_v3 = vmax.f32 %v535_v63, 0.0  ;;  %v639_v7 = vpack.c.bf16 %v609_v0, %v607_v4  ;;  %v539_v11 = vadd.f32 %v538_v1, %v1621_v56 }
 0x26b   :  { %v540_v5 = vpop.f32.mrf.mxu0 }
 0x26c   :  { %v640_v6 = vpack.c.bf16 %v610_v3, %v608_v2  ;;  %v541_v9 = vadd.f32 %v540_v5, %v1619_v55  ;;  %v611_v18 = vmax.f32 %v539_v11, 0.0 }
 0x26d   :  { %v542_v8 = vpop.f32.mrf.mxu0 }
 0x26e   :  { %v543_v10 = vadd.f32 %v542_v8, %v1621_v56  ;;  %816 = vmatprep.mubr.bf16.mxu1 %v640_v6  ;;  %v612_v16 = vmax.f32 %v541_v9, 0.0 }
 0x26f   :  { %v544_v12 = vpop.f32.mrf.mxu0  ;;  %817 = vmatmul.mubr.bf16.vlgmr.msra.gmra.mxu1 %v639_v7 }
 0x270   :  { %v545_v13 = vadd.f32 %v544_v12, %v1619_v55  ;;  %1329 = vmatpush3.bf16.msra.mxu1 %v1379_v48  ;;  %v613_v14 = vmax.f32 %v543_v10, 0.0 }
 0x271   :  { %v548_v15 = vpop.f32.mrf.mxu0 }
 0x272   :  { %v614_v17 = vmax.f32 %v545_v13, 0.0  ;;  %v641_v21 = vpack.c.bf16 %v613_v14, %v611_v18  ;;  %v549_v25 = vadd.f32 %v548_v15, %v1621_v56 }
 0x273   :  { %v550_v19 = vpop.f32.mrf.mxu0 }
 0x274   :  { %v642_v20 = vpack.c.bf16 %v614_v17, %v612_v16  ;;  %v551_v23 = vadd.f32 %v550_v19, %v1619_v55  ;;  %v615_v32 = vmax.f32 %v549_v25, 0.0 }
 0x275   :  { %v552_v22 = vpop.f32.mrf.mxu0 }
 0x276   :  { %v553_v24 = vadd.f32 %v552_v22, %v1621_v56  ;;  %824 = vmatprep.mubr.bf16.mxu1 %v642_v20  ;;  %v616_v30 = vmax.f32 %v551_v23, 0.0 }
 0x277   :  { %v554_v26 = vpop.f32.mrf.mxu0  ;;  %825 = vmatmul.mubr.bf16.gmra.mxu1 %v641_v21 }
 0x278   :  { %v555_v27 = vadd.f32 %v554_v26, %v1619_v55  ;;  %v617_v28 = vmax.f32 %v553_v24, 0.0 }
 0x279   :  { %v558_v29 = vpop.f32.mrf.mxu0 }
 0x27a   :  { %v618_v31 = vmax.f32 %v555_v27, 0.0  ;;  %v643_v35 = vpack.c.bf16 %v617_v28, %v615_v32  ;;  %v559_v40 = vadd.f32 %v558_v29, %v1621_v56 }
 0x27b   :  { %v560_v33 = vpop.f32.mrf.mxu0 }
 0x27c   :  { %v644_v34 = vpack.c.bf16 %v618_v31, %v616_v30  ;;  %v561_v37 = vadd.f32 %v560_v33, %v1619_v55  ;;  %v619_v46 = vmax.f32 %v559_v40, 0.0 }
 0x27d   :  { %v562_v36 = vpop.f32.mrf.mxu0 }
 0x27e   :  { %v563_v39 = vadd.f32 %v562_v36, %v1621_v56  ;;  %832 = vmatprep.mubr.bf16.mxu1 %v644_v34  ;;  %v620_v45 = vmax.f32 %v561_v37, 0.0 }
 0x27f   :  { %v564_v41 = vpop.f32.mrf.mxu0  ;;  %833 = vmatmul.mubr.bf16.gmra.mxu1 %v643_v35 }
 0x280   :  { %v565_v42 = vadd.f32 %v564_v41, %v1619_v55  ;;  %v621_v43 = vmax.f32 %v563_v39, 0.0 }
 0x281   :  { %v568_v44 = vpop.f32.mrf.mxu0 }
 0x282   :  { %v622_v38 = vmax.f32 %v565_v42, 0.0  ;;  %v645_v49 = vpack.c.bf16 %v621_v43, %v619_v46  ;;  %v569_v53 = vadd.f32 %v568_v44, %v1621_v56  ;;  %v1380_v43 = vld [vmem:[%s1784_s5 + $0x10] sm:$0xff]   ;;  %v1667_v46 = vld [vmem:[%s1782_s6 + $0x3] ss:$0 sm:$0xff] }
 0x283   :  { %v570_v47 = vpop.f32.mrf.mxu0  ;;  %1303 = vmatprep.subr.bf16.mxu0 %v1380_v43  ;;  %1326 = vmatprep.subr.bf16.mxu1 %v1380_v43 }
 0x284   :  { %v646_v48 = vpack.c.bf16 %v622_v38, %v620_v45  ;;  %v571_v51 = vadd.f32 %v570_v47, %v1619_v55  ;;  %v623_v62 = vmax.f32 %v569_v53, 0.0  ;;  %1304 = vmatpush3.bf16.msra.mxu0 %v1380_v43  ;;  %1330 = vmatpush3.bf16.msra.mxu1 %v1380_v43 }
 0x285   :  { %v572_v50 = vpop.f32.mrf.mxu0 }
 0x286   :  { %v573_v52 = vadd.f32 %v572_v50, %v1621_v56  ;;  %840 = vmatprep.mubr.bf16.mxu1 %v646_v48  ;;  %v624_v60 = vmax.f32 %v571_v51, 0.0 }
 0x287   :  { %v574_v54 = vpop.f32.mrf.mxu0  ;;  %841 = vmatmul.mubr.bf16.gmra.mxu1 %v645_v49 }
 0x288   :  { %v575_v57 = vadd.f32 %v574_v54, %v1619_v55  ;;  %v625_v58 = vmax.f32 %v573_v52, 0.0 }
 0x289   :  { %v578_v59 = vpop.f32.mrf.mxu0 }
 0x28a   :  { %v626_v61 = vmax.f32 %v575_v57, 0.0  ;;  %v647_v1 = vpack.c.bf16 %v625_v58, %v623_v62  ;;  %v579_v5 = vadd.f32 %v578_v59, %v1621_v56 }
 0x28b   :  { %v580_v63 = vpop.f32.mrf.mxu0 }
 0x28c   :  { %v648_v0 = vpack.c.bf16 %v626_v61, %v624_v60  ;;  %v581_v3 = vadd.f32 %v580_v63, %v1619_v55  ;;  %v627_v12 = vmax.f32 %v579_v5, 0.0 }
 0x28d   :  { %v582_v2 = vpop.f32.mrf.mxu0 }
 0x28e   :  { %v583_v4 = vadd.f32 %v582_v2, %v1621_v56  ;;  %848 = vmatprep.mubr.bf16.mxu1 %v648_v0  ;;  %v628_v10 = vmax.f32 %v581_v3, 0.0 }
 0x28f   :  { %v584_v6 = vpop.f32.mrf.mxu0  ;;  %849 = vmatmul.mubr.bf16.gmra.mxu1 %v647_v1 }
 0x290   :  { %v585_v7 = vadd.f32 %v584_v6, %v1619_v55  ;;  %v629_v8 = vmax.f32 %v583_v4, 0.0 }
 0x291   :  { %v588_v9 = vpop.f32.mrf.mxu0 }
 0x292   :  { %v630_v11 = vmax.f32 %v585_v7, 0.0  ;;  %v649_v15 = vpack.c.bf16 %v629_v8, %v627_v12  ;;  %v589_v19 = vadd.f32 %v588_v9, %v1621_v56 }
 0x293   :  { %v590_v13 = vpop.f32.mrf.mxu0 }
 0x294   :  { %v650_v14 = vpack.c.bf16 %v630_v11, %v628_v10  ;;  %v591_v17 = vadd.f32 %v590_v13, %v1619_v55  ;;  %v631_v26 = vmax.f32 %v589_v19, 0.0 }
 0x295   :  { %v592_v16 = vpop.f32.mrf.mxu0 }
 0x296   :  { %v593_v18 = vadd.f32 %v592_v16, %v1621_v56  ;;  %856 = vmatprep.mubr.bf16.mxu1 %v650_v14  ;;  %v632_v24 = vmax.f32 %v591_v17, 0.0 }
 0x297   :  { %v594_v20 = vpop.f32.mrf.mxu0  ;;  %857 = vmatmul.mubr.bf16.gmra.mxu1 %v649_v15 }
 0x298   :  { %v595_v21 = vadd.f32 %v594_v20, %v1619_v55  ;;  %v633_v22 = vmax.f32 %v593_v18, 0.0 }
 0x299   :  { %v598_v23 = vpop.f32.mrf.mxu0 }
 0x29a   :  { %v634_v25 = vmax.f32 %v595_v21, 0.0  ;;  %v651_v29 = vpack.c.bf16 %v633_v22, %v631_v26  ;;  %v599_v33 = vadd.f32 %v598_v23, %v1621_v56 }
 0x29b   :  { %v600_v27 = vpop.f32.mrf.mxu0 }
 0x29c   :  { %v652_v28 = vpack.c.bf16 %v634_v25, %v632_v24  ;;  %v601_v31 = vadd.f32 %v600_v27, %v1619_v55  ;;  %v635_v40 = vmax.f32 %v599_v33, 0.0 }
 0x29d   :  { %v602_v30 = vpop.f32.mrf.mxu0 }
 0x29e   :  { %v603_v32 = vadd.f32 %v602_v30, %v1621_v56  ;;  %864 = vmatprep.mubr.bf16.mxu1 %v652_v28  ;;  %v636_v37 = vmax.f32 %v601_v31, 0.0  ;;  %v1382_v56 = vld [vmem:[%s1784_s5] sm:$0xff]  }
 0x29f   :  { %v604_v34 = vpop.f32.mrf.mxu0  ;;  %865 = vmatmul.mubr.bf16.gmra.mxu1 %v651_v29 }
 0x2a0   :  { %v605_v35 = vadd.f32 %v604_v34, %v1619_v55  ;;  %v637_v36 = vmax.f32 %v603_v32, 0.0  ;;  %v1381_v55 = vld [vmem:[%s1784_s5 + $0x8] sm:$0xff]  }
 0x2a1   :  { %1305 = vmatprep.subr.bf16.mxu0 %v1381_v55  ;;  %1327 = vmatprep.subr.bf16.mxu1 %v1381_v55 }
 0x2a2   :  { %v638_v39 = vmax.f32 %v605_v35, 0.0  ;;  %v653_v42 = vpack.c.bf16 %v637_v36, %v635_v40  ;;  %1306 = vmatpush3.bf16.msra.mxu0 %v1381_v55  ;;  %1331 = vmatpush3.bf16.msra.mxu1 %v1381_v55 }
 0x2a3   :  { %1307 = vmatprep.subr.bf16.mxu0 %v1382_v56  ;;  %1328 = vmatprep.subr.bf16.mxu1 %v1382_v56 }
 0x2a4   :  { %v654_v41 = vpack.c.bf16 %v638_v39, %v636_v37 }
 0x2a6   :  { %872 = vmatprep.mubr.bf16.mxu1 %v654_v41  ;;  %1308 = vmatpush3.bf16.msra.mxu0 %v1382_v56 }
 0x2a7   :  { %873 = vmatmul.mubr.bf16.gmra.mxu1 %v653_v42 }
 0x2a8   :  { %1332 = vmatpush3.bf16.msra.mxu1 %v1382_v56 }
 0x32f   :  { %v1199_v44 = vpop.f32.mrf.mxu1 }
 0x331   :  { %v1200_v45 = vpop.f32.mrf.mxu1 }
 0x332   :  { %v1201_v38 = vadd.f32 %v1200_v45, %v1199_v44 }
 0x333   :  { %v1202_v47 = vpop.f32.mrf.mxu1 }
 0x334   :  { %v819_v49 = vadd.f32 %v1201_v38, %v1667_v46 }
 0x335   :  { %v1203_v48 = vpop.f32.mrf.mxu1 }
 0x336   :  { %v1204_v50 = vadd.f32 %v1203_v48, %v1202_v47  ;;  %v881_v54 = vmax.f32 %v819_v49, 0.0 }
 0x337   :  { %v1205_v51 = vpop.f32.mrf.mxu1 }
 0x338   :  { %v822_v52 = vadd.f32 %v1204_v50, %v1667_v46 }
 0x339   :  { %v1206_v53 = vpop.f32.mrf.mxu1 }
 0x33a   :  { %v882_v57 = vmax.f32 %v822_v52, 0.0  ;;  %v1207_v58 = vadd.f32 %v1206_v53, %v1205_v51 }
 0x33b   :  { %v1208_v59 = vpop.f32.mrf.mxu1 }
 0x33c   :  { %v897_v60 = vpack.c.bf16 %v882_v57, %v881_v54  ;;  %v827_v62 = vadd.f32 %v1207_v58, %v1667_v46 }
 0x33d   :  { %v1209_v61 = vpop.f32.mrf.mxu1 }
 0x33e   :  { %v1210_v63 = vadd.f32 %v1209_v61, %v1208_v59  ;;  %1309 = vmatprep.mubr.msk.bf16.mxu0 %vm239_vm1, %v897_v60  ;;  %v883_v3 = vmax.f32 %v827_v62, 0.0 }
 0x33f   :  { %v1211_v0 = vpop.f32.mrf.mxu1 }
 0x340   :  { %v830_v1 = vadd.f32 %v1210_v63, %v1667_v46 }
 0x341   :  { %v1212_v2 = vpop.f32.mrf.mxu1 }
 0x342   :  { %v884_v4 = vmax.f32 %v830_v1, 0.0  ;;  %v1213_v5 = vadd.f32 %v1212_v2, %v1211_v0 }
 0x343   :  { %v1214_v6 = vpop.f32.mrf.mxu1 }
 0x344   :  { %v898_v7 = vpack.c.bf16 %v884_v4, %v883_v3  ;;  %v835_v9 = vadd.f32 %v1213_v5, %v1667_v46 }
 0x345   :  { %v1215_v8 = vpop.f32.mrf.mxu1 }
 0x346   :  { %v1216_v10 = vadd.f32 %v1215_v8, %v1214_v6  ;;  %1310 = vmatmul.mubr.msk.bf16.vlgmr.msra.gmra.mxu0 %vm239_vm1, %v898_v7  ;;  %v885_v14 = vmax.f32 %v835_v9, 0.0  ;;  %v1696_v7 = vld [vmem:[%s1782_s6 + $0x4] ss:$0 sm:$0xff] }
 0x347   :  { %v1217_v11 = vpop.f32.mrf.mxu1 }
 0x348   :  { %v838_v12 = vadd.f32 %v1216_v10, %v1667_v46 }
 0x349   :  { %v1218_v13 = vpop.f32.mrf.mxu1 }
 0x34a   :  { %v886_v15 = vmax.f32 %v838_v12, 0.0  ;;  %v1219_v16 = vadd.f32 %v1218_v13, %v1217_v11 }
 0x34b   :  { %v1220_v17 = vpop.f32.mrf.mxu1 }
 0x34c   :  { %v899_v18 = vpack.c.bf16 %v886_v15, %v885_v14  ;;  %v843_v20 = vadd.f32 %v1219_v16, %v1667_v46 }
 0x34d   :  { %v1221_v19 = vpop.f32.mrf.mxu1 }
 0x34e   :  { %v1222_v21 = vadd.f32 %v1221_v19, %v1220_v17  ;;  %1313 = vmatprep.mubr.msk.bf16.mxu0 %vm239_vm1, %v899_v18  ;;  %v887_v25 = vmax.f32 %v843_v20, 0.0 }
 0x34f   :  { %v1223_v22 = vpop.f32.mrf.mxu1 }
 0x350   :  { %v846_v23 = vadd.f32 %v1222_v21, %v1667_v46 }
 0x351   :  { %v1224_v24 = vpop.f32.mrf.mxu1 }
 0x352   :  { %v888_v26 = vmax.f32 %v846_v23, 0.0  ;;  %v1225_v27 = vadd.f32 %v1224_v24, %v1223_v22 }
 0x353   :  { %v1226_v28 = vpop.f32.mrf.mxu1 }
 0x354   :  { %v900_v29 = vpack.c.bf16 %v888_v26, %v887_v25  ;;  %v851_v31 = vadd.f32 %v1225_v27, %v1667_v46 }
 0x355   :  { %v1227_v30 = vpop.f32.mrf.mxu1 }
 0x356   :  { %v1228_v32 = vadd.f32 %v1227_v30, %v1226_v28  ;;  %1314 = vmatmul.mubr.msk.bf16.gmra.mxu0 %vm239_vm1, %v900_v29  ;;  %v889_v36 = vmax.f32 %v851_v31, 0.0 }
 0x357   :  { %v1229_v33 = vpop.f32.mrf.mxu1 }
 0x358   :  { %v854_v34 = vadd.f32 %v1228_v32, %v1667_v46 }
 0x359   :  { %v1230_v35 = vpop.f32.mrf.mxu1 }
 0x35a   :  { %v890_v37 = vmax.f32 %v854_v34, 0.0  ;;  %v1231_v39 = vadd.f32 %v1230_v35, %v1229_v33 }
 0x35b   :  { %v1232_v40 = vpop.f32.mrf.mxu1 }
 0x35c   :  { %v901_v41 = vpack.c.bf16 %v890_v37, %v889_v36  ;;  %v859_v43 = vadd.f32 %v1231_v39, %v1667_v46 }
 0x35d   :  { %v1233_v42 = vpop.f32.mrf.mxu1 }
 0x35e   :  { %v1234_v55 = vadd.f32 %v1233_v42, %v1232_v40  ;;  %1317 = vmatprep.mubr.msk.bf16.mxu0 %vm239_vm1, %v901_v41  ;;  %v891_v38 = vmax.f32 %v859_v43, 0.0 }
 0x35f   :  { %v1235_v56 = vpop.f32.mrf.mxu1 }
 0x360   :  { %v862_v44 = vadd.f32 %v1234_v55, %v1667_v46 }
 0x361   :  { %v1236_v45 = vpop.f32.mrf.mxu1 }
 0x362   :  { %v892_v47 = vmax.f32 %v862_v44, 0.0  ;;  %v1237_v48 = vadd.f32 %v1236_v45, %v1235_v56 }
 0x363   :  { %v1238_v49 = vpop.f32.mrf.mxu1 }
 0x364   :  { %v902_v50 = vpack.c.bf16 %v892_v47, %v891_v38  ;;  %v867_v52 = vadd.f32 %v1237_v48, %v1667_v46 }
 0x365   :  { %v1239_v51 = vpop.f32.mrf.mxu1 }
 0x366   :  { %v1240_v53 = vadd.f32 %v1239_v51, %v1238_v49  ;;  %1318 = vmatmul.mubr.msk.bf16.gmra.mxu0 %vm239_vm1, %v902_v50  ;;  %v893_v59 = vmax.f32 %v867_v52, 0.0 }
 0x367   :  { %v1241_v54 = vpop.f32.mrf.mxu1 }
 0x368   :  { %v870_v57 = vadd.f32 %v1240_v53, %v1667_v46 }
 0x369   :  { %v1242_v58 = vpop.f32.mrf.mxu1 }
 0x36a   :  { %v894_v60 = vmax.f32 %v870_v57, 0.0  ;;  %v1243_v61 = vadd.f32 %v1242_v58, %v1241_v54 }
 0x36b   :  { %v1244_v62 = vpop.f32.mrf.mxu1 }
 0x36c   :  { %v903_v63 = vpack.c.bf16 %v894_v60, %v893_v59  ;;  %v875_v1 = vadd.f32 %v1243_v61, %v1667_v46 }
 0x36d   :  { %v1245_v0 = vpop.f32.mrf.mxu1 }
 0x36e   :  { %v1246_v2 = vadd.f32 %v1245_v0, %v1244_v62  ;;  %1321 = vmatprep.mubr.msk.bf16.mxu1 %vm239_vm1, %v903_v63  ;;  %v895_v4 = vmax.f32 %v875_v1, 0.0 }
 0x370   :  { %v878_v3 = vadd.f32 %v1246_v2, %v1667_v46 }
 0x372   :  { %v896_v5 = vmax.f32 %v878_v3, 0.0 }
 0x374   :  { %v904_v6 = vpack.c.bf16 %v896_v5, %v895_v4 }
 0x376   :  { %1322 = vmatmul.mubr.msk.bf16.vlgmr.msra.gmra.mxu1 %vm239_vm1, %v904_v6 }
 0x406   :  { %v1311_v8 = vpop.f32.mrf.mxu0 }
 0x407   :  { %v1005_v9 = vadd.f32 %v1311_v8, %v1696_v7 }
 0x408   :  { %v996_v10 = vpop.f32.mrf.mxu0 }
 0x409   :  { %v1061_v11 = vmax.f32 %v1005_v9, 0.0  ;;  %v997_v12 = vadd.f32 %v996_v10, %v1696_v7 }
 0x40a   :  { %v1312_v13 = vpop.f32.mrf.mxu0 }
 0x40b   :  { %1078 = vst.msk [vmem:[%s1785_s7 + $0x10] sm:$0xff] %vm1075_vm2, %v1061_v11  ;;  %v1059_v46 = vmax.f32 %v997_v12, 0.0  ;;  %v1008_v14 = vadd.f32 %v1312_v13, %v1696_v7 }
 0x40c   :  { %v999_v15 = vpop.f32.mrf.mxu0 }
 0x40d   :  { %1076 = vst.msk [vmem:[%s1785_s7] sm:$0xff] %vm1075_vm2, %v1059_v46  ;;  %v1062_v16 = vmax.f32 %v1008_v14, 0.0  ;;  %v1000_v17 = vadd.f32 %v999_v15, %v1696_v7 }
 0x40f   :  { %1079 = vst.msk [vmem:[%s1785_s7 + $0x18] sm:$0xff] %vm1075_vm2, %v1062_v16  ;;  %v1060_v18 = vmax.f32 %v1000_v17, 0.0 }
 0x411   :  { %1077 = vst.msk [vmem:[%s1785_s7 + $0x8] sm:$0xff] %vm1075_vm2, %v1060_v18 }
 0x416   :  { %v1315_v19 = vpop.f32.mrf.mxu0 }
 0x417   :  { %v1021_v20 = vadd.f32 %v1315_v19, %v1696_v7 }
 0x418   :  { %v1012_v21 = vpop.f32.mrf.mxu0 }
 0x419   :  { %v1065_v22 = vmax.f32 %v1021_v20, 0.0  ;;  %v1013_v23 = vadd.f32 %v1012_v21, %v1696_v7 }
 0x41a   :  { %v1316_v24 = vpop.f32.mrf.mxu0 }
 0x41b   :  { %1082 = vst.msk [vmem:[%s1785_s7 + $0x30] sm:$0xff] %vm1075_vm2, %v1065_v22  ;;  %v1063_v25 = vmax.f32 %v1013_v23, 0.0  ;;  %v1024_v26 = vadd.f32 %v1316_v24, %v1696_v7 }
 0x41c   :  { %v1015_v27 = vpop.f32.mrf.mxu0 }
 0x41d   :  { %1080 = vst.msk [vmem:[%s1785_s7 + $0x20] sm:$0xff] %vm1075_vm2, %v1063_v25  ;;  %v1066_v28 = vmax.f32 %v1024_v26, 0.0  ;;  %v1016_v29 = vadd.f32 %v1015_v27, %v1696_v7 }
 0x41f   :  { %1083 = vst.msk [vmem:[%s1785_s7 + $0x38] sm:$0xff] %vm1075_vm2, %v1066_v28  ;;  %v1064_v30 = vmax.f32 %v1016_v29, 0.0 }
 0x421   :  { %1081 = vst.msk [vmem:[%s1785_s7 + $0x28] sm:$0xff] %vm1075_vm2, %v1064_v30 }
 0x426   :  { %v1319_v31 = vpop.f32.mrf.mxu0 }
 0x427   :  { %v1037_v32 = vadd.f32 %v1319_v31, %v1696_v7 }
 0x428   :  { %v1028_v33 = vpop.f32.mrf.mxu0 }
 0x429   :  { %v1069_v34 = vmax.f32 %v1037_v32, 0.0  ;;  %v1029_v35 = vadd.f32 %v1028_v33, %v1696_v7 }
 0x42a   :  { %v1320_v36 = vpop.f32.mrf.mxu0 }
 0x42b   :  { %1086 = vst.msk [vmem:[%s1785_s7 + $0x50] sm:$0xff] %vm1075_vm2, %v1069_v34  ;;  %v1067_v37 = vmax.f32 %v1029_v35, 0.0  ;;  %v1040_v39 = vadd.f32 %v1320_v36, %v1696_v7 }
 0x42c   :  { %v1031_v40 = vpop.f32.mrf.mxu0 }
 0x42d   :  { %1084 = vst.msk [vmem:[%s1785_s7 + $0x40] sm:$0xff] %vm1075_vm2, %v1067_v37  ;;  %v1070_v41 = vmax.f32 %v1040_v39, 0.0  ;;  %v1032_v42 = vadd.f32 %v1031_v40, %v1696_v7 }
 0x42f   :  { %1087 = vst.msk [vmem:[%s1785_s7 + $0x58] sm:$0xff] %vm1075_vm2, %v1070_v41  ;;  %v1068_v43 = vmax.f32 %v1032_v42, 0.0 }
 0x431   :  { %1085 = vst.msk [vmem:[%s1785_s7 + $0x48] sm:$0xff] %vm1075_vm2, %v1068_v43 }
 0x436   :  { %v1323_v55 = vpop.f32.mrf.mxu1 }
 0x437   :  { %v1053_v56 = vadd.f32 %v1323_v55, %v1696_v7 }
 0x438   :  { %v1044_v44 = vpop.f32.mrf.mxu1 }
 0x439   :  { %v1073_v45 = vmax.f32 %v1053_v56, 0.0  ;;  %v1045_v38 = vadd.f32 %v1044_v44, %v1696_v7 }
 0x43a   :  { %v1324_v47 = vpop.f32.mrf.mxu1 }
 0x43b   :  { %1090 = vst.msk [vmem:[%s1785_s7 + $0x70] sm:$0xff] %vm1075_vm2, %v1073_v45  ;;  %v1071_v48 = vmax.f32 %v1045_v38, 0.0  ;;  %v1056_v49 = vadd.f32 %v1324_v47, %v1696_v7 }
 0x43c   :  { %v1047_v50 = vpop.f32.mrf.mxu1 }
 0x43d   :  { %1088 = vst.msk [vmem:[%s1785_s7 + $0x60] sm:$0xff] %vm1075_vm2, %v1071_v48  ;;  %v1074_v51 = vmax.f32 %v1056_v49, 0.0  ;;  %v1048_v52 = vadd.f32 %v1047_v50, %v1696_v7 }
 0x43f   :  { %1091 = vst.msk [vmem:[%s1785_s7 + $0x78] sm:$0xff] %vm1075_vm2, %v1074_v51  ;;  %v1072_v53 = vmax.f32 %v1048_v52, 0.0 }
 0x441   :  { %1089 = vst.msk [vmem:[%s1785_s7 + $0x68] sm:$0xff] %vm1075_vm2, %v1072_v53 }

</bundles_post_ra>
